<compile_context>
chip_gen: v6e
topology: v6e:2x2x1
jax: 0.10.0
libtpu: 0.0.40
codegen_flags: <defaults>
</compile_context>

<pallas_src>
import functools

import jax
import jax.numpy as jnp
from jax.experimental import pallas as pl
from jax.experimental.pallas import tpu as pltpu

_LANE = 128


def _round_up(x: int, m: int) -> int:
    return ((x + m - 1) // m) * m


def _vmem_capacity_bytes() -> int:
    try:
        return int(pltpu.get_tpu_info().vmem_capacity_bytes)
    except Exception:
        return 64 << 20  # conservative fallback: v7x per-TensorCore VMEM


def _pick_tile_b(b: int, max_tile: int) -> int:
    """Batch tile: multiple of 16 (8 for tiny batches), never larger than the
    batch extent, and >=2 grid programs whenever the batch permits so v7x's two
    TensorCores both run the "parallel" batch axis."""
    if b < 8:
        return b  # full-extent block, exempt from the 8-row rule
    quantum = 16 if b >= 16 else 8
    if b < 2 * quantum:
        return (b // quantum) * quantum
    n_prog = max(2, pl.cdiv(b, max_tile))
    tile = _round_up(pl.cdiv(b, n_prog), quantum)
    return max(quantum, min(tile, (b // quantum) * quantum))


def _classifier_head_kernel(x_ref, w1_ref, b1_ref, w2_ref, b2_ref, o_ref, *,
                            fc2_on_mxu: bool):
    # x:  (TB, F)  native dtype     w1: (F, TH) bf16
    # b1: (1, TH)  f32              w2: (1, TH) f32  |  (TH, 1) bf16
    # b2: (1, 1)   f32              o:  (TB, 1) f32 (accumulated over the H axis)
    j = pl.program_id(1)  # hidden-dim (reduction) axis, "arbitrary", innermost

    @pl.when(j == 0)
    def _():  # fc2 bias added exactly once
        o_ref[...] = jnp.broadcast_to(b2_ref[...], o_ref.shape).astype(o_ref.dtype)

    x = x_ref[...].astype(jnp.bfloat16)          # in-kernel cast; x streamed as-is from HBM
    h = jnp.dot(x, w1_ref[...], preferred_element_type=jnp.float32)
    h = jnp.maximum(h + b1_ref[...], 0.0)        # bias + ReLU on VPU, f32
    if fc2_on_mxu:
        part = jnp.dot(h.astype(jnp.bfloat16), w2_ref[...],
                       preferred_element_type=jnp.float32)        # (TB, 1) MXU matvec
    else:
        part = jnp.sum(h * w2_ref[...], axis=-1, keepdims=True)   # VPU mul + XLU reduce
    o_ref[...] += part


def prepare_classifier_head_params(w1, b1, w2, b2):
    """One-time prep from PyTorch nn.Linear layout (w1:(H,F), b1:(H,), w2:(1,H), b2:(1,)).

    Pads H to a multiple of 128 (zero padding is exact: padded w2 entries are zero,
    ReLU(0)*0 contributes nothing), transposes w1 to (F, H_pad) bf16, and lays out
    w2 for the VPU path (1, H_pad) f32 when H_pad <= 256, else as an (H_pad, 1)
    bf16 column for the MXU matvec path.  F is NOT padded (x streams unpadded)."""
    w1 = jnp.asarray(w1, jnp.float32)
    b1 = jnp.asarray(b1, jnp.float32)
    w2 = jnp.asarray(w2, jnp.float32).reshape(-1)
    b2 = jnp.asarray(b2, jnp.float32)

    h, f = w1.shape
    h_pad = _round_up(h, _LANE)

    w1_t = jnp.zeros((f, h_pad), jnp.float32).at[:, :h].set(w1.T).astype(jnp.bfloat16)
    b1_r = jnp.zeros((1, h_pad), jnp.float32).at[0, :h].set(b1)
    if h_pad > 256:   # large H: fc2 on the MXU
        w2_p = jnp.zeros((h_pad, 1), jnp.float32).at[:h, 0].set(w2).astype(jnp.bfloat16)
    else:             # small H: fc2 stays on the VPU in f32
        w2_p = jnp.zeros((1, h_pad), jnp.float32).at[0, :h].set(w2)
    b2_r = b2.reshape(1, 1)
    return w1_t, b1_r, w2_p, b2_r


def classifier_head(x, params):
    """x: (B, in_features) -> (B, 1) float32.  params from prepare_classifier_head_params."""
    w1_p, b1_r, w2_p, b2_r = params
    b, f = x.shape
    f_w, h_pad = w1_p.shape
    assert f_w == f, (f_w, f)
    fc2_on_mxu = (w2_p.shape == (h_pad, 1))

    x_isz = jnp.dtype(x.dtype).itemsize
    w1_isz = jnp.dtype(w1_p.dtype).itemsize

    # ---- generation-aware VMEM budget --------------------------------------
    cap = _vmem_capacity_bytes()
    vmem_limit = int(min(cap * 3 // 4, 96 << 20))  # ~96 MiB on 128-MiB parts, 48 MiB on v7x
    budget = int(vmem_limit * 0.8)                 # headroom for compiler-internal scratch

    # ---- hidden-dim tiling: keep w1 resident when it fits, else stream -----
    # (w1 budgeted at 2x even though the constant block requests Buffered(1).)
    if 2 * f * h_pad * w1_isz <= budget // 2:
        tile_h, nh = h_pad, 1
        w1_vmem = 2 * f * h_pad * w1_isz
    else:
        m = h_pad // _LANE
        k = 1
        for cand in range(m, 0, -1):               # largest 128-col multiple dividing h_pad
            if m % cand == 0 and 2 * f * _LANE * cand * w1_isz <= budget // 2:
                k = cand
                break
        tile_h, nh = _LANE * k, h_pad // (_LANE * k)
        w1_vmem = 2 * f * tile_h * w1_isz          # double-buffered streaming over H

    # ---- batch tile from the remaining budget -------------------------------
    per_row = 2 * f * x_isz + 4 * tile_h + 16      # x (dbl-buf) + f32 intermediate + out
    rem = max(budget - w1_vmem - 16 * tile_h, 16 * per_row)
    max_tile_b = max(16, min(1024, (rem // per_row) // 16 * 16))
    tile_b = _pick_tile_b(b, max_tile_b)
    nb = pl.cdiv(b, tile_b)

    const_mode = pl.Buffered(1) if nh == 1 else None   # single-buffer resident weights
    w2_block = (tile_h, 1) if fc2_on_mxu else (1, tile_h)
    w2_index = (lambda i, j: (j, 0)) if fc2_on_mxu else (lambda i, j: (0, j))

    cost = pl.CostEstimate(
        flops=2 * b * f * h_pad + 4 * b * h_pad,
        transcendentals=0,
        bytes_accessed=(b * f * x_isz * nh
                        + f * h_pad * w1_isz * (1 if nh == 1 else nb)
                        + 12 * h_pad + 4 * b),
    )

    kernel = functools.partial(_classifier_head_kernel, fc2_on_mxu=fc2_on_mxu)
    return pl.pallas_call(
        kernel,
        out_shape=jax.ShapeDtypeStruct((b, 1), jnp.float32),
        grid=(nb, nh),
        in_specs=[
            pl.BlockSpec((tile_b, f), lambda i, j: (i, 0)),      # x: native dtype, unpadded F
            pl.BlockSpec((f, tile_h), lambda i, j: (0, j), pipeline_mode=const_mode),  # w1
            pl.BlockSpec((1, tile_h), lambda i, j: (0, j), pipeline_mode=const_mode),  # b1
            pl.BlockSpec(w2_block, w2_index, pipeline_mode=const_mode),                # w2
            pl.BlockSpec((1, 1), lambda i, j: (0, 0), pipeline_mode=const_mode),       # b2
        ],
        out_specs=pl.BlockSpec((tile_b, 1), lambda i, j: (i, 0)),
        compiler_params=pltpu.CompilerParams(
            dimension_semantics=("parallel", "arbitrary"),       # batch sharded over 2 TCs
            vmem_limit_bytes=vmem_limit,
        ),
        cost_estimate=cost,
    )(x, w1_p, b1_r, w2_p, b2_r)


def init_classifier_head_params(key, in_features, hidden_features=None):
    """Deterministic PyTorch-style (uniform +/- 1/sqrt(fan_in)) init."""
    hidden_features = hidden_features or in_features // 2
    k1, k2, k3, k4 = jax.random.split(key, 4)
    bound1 = 1.0 / (in_features ** 0.5)
    bound2 = 1.0 / (hidden_features ** 0.5)
    w1 = jax.random.uniform(k1, (hidden_features, in_features), jnp.float32, -bound1, bound1)
    b1 = jax.random.uniform(k2, (hidden_features,), jnp.float32, -bound1, bound1)
    w2 = jax.random.uniform(k3, (1, hidden_features), jnp.float32, -bound2, bound2)
    b2 = jax.random.uniform(k4, (1,), jnp.float32, -bound2, bound2)
    return w1, b1, w2, b2


if __name__ == "__main__":
    key = jax.random.PRNGKey(0)
    k_x, k_p = jax.random.split(key)

    batch, in_features = 8, 64
    hidden_features = in_features // 2            # module default: hidden = in_features // 2

    x = jax.random.normal(k_x, (batch, in_features), jnp.float32)
    w1, b1, w2, b2 = init_classifier_head_params(k_p, in_features, hidden_features)

    # One-time param prep (transpose / pad / bf16 cast), then a jitted call path.
    params = prepare_classifier_head_params(w1, b1, w2, b2)
    head = jax.jit(functools.partial(classifier_head, params=params))

    out = jax.block_until_ready(head(x))

    # Pure-JAX f32 reference (bf16 w1 / in-kernel bf16 x -> loosened tolerance).
    ref = jnp.maximum(x @ w1.T + b1, 0.0) @ w2.T + b2
    assert out.shape == (batch, 1), out.shape
    assert jnp.allclose(out, ref, atol=2e-2, rtol=2e-2), \
        f"max abs err {jnp.max(jnp.abs(out - ref))}"

    print("KERNEL_OK")
</pallas_src>

<mosaic_0001>
module attributes {stable_mosaic.version = 11 : i64} {
  func.func @_classifier_head_kernel(%arg0: i32, %arg1: i32, %arg2: memref<8x64xf32, #tpu.memory_space<vmem>>, %arg3: memref<64x128xbf16, #tpu.memory_space<vmem>>, %arg4: memref<1x128xf32, #tpu.memory_space<vmem>>, %arg5: memref<1x128xf32, #tpu.memory_space<vmem>>, %arg6: memref<1x1xf32, #tpu.memory_space<vmem>>, %arg7: memref<8x1xf32, #tpu.memory_space<vmem>>) attributes {dimension_semantics = [#tpu.dimension_semantics<parallel>, #tpu.dimension_semantics<arbitrary>], iteration_bounds = array<i64: 1, 1>, scalar_prefetch = 0 : i64, scratch_operands = 0 : i64, tpu.core_type = #tpu.core_type<tc>, window_params = [{transform_indices = @transform_0, window_bounds = array<i64: 8, 64>}, {pipeline_mode = #tpu.pipeline_mode<synchronous>, transform_indices = @transform_1, window_bounds = array<i64: 64, 128>}, {pipeline_mode = #tpu.pipeline_mode<synchronous>, transform_indices = @transform_2, window_bounds = array<i64: 1, 128>}, {pipeline_mode = #tpu.pipeline_mode<synchronous>, transform_indices = @transform_3, window_bounds = array<i64: 1, 128>}, {pipeline_mode = #tpu.pipeline_mode<synchronous>, transform_indices = @transform_4, window_bounds = array<i64: 1, 1>}, {transform_indices = @transform_5, window_bounds = array<i64: 8, 1>}]} {
    %c0_i32 = arith.constant 0 : i32
    %0 = arith.cmpi eq, %arg1, %c0_i32 : i32
    %1 = arith.extui %0 : i1 to i32
    %c0_i32_0 = arith.constant 0 : i32
    %2 = arith.cmpi ne, %1, %c0_i32_0 : i32
    scf.if %2 {
      %c0_14 = arith.constant 0 : index
      %c0_15 = arith.constant 0 : index
      %20 = vector.load %arg6[%c0_14, %c0_15] : memref<1x1xf32, #tpu.memory_space<vmem>>, vector<1x1xf32>
      %21 = vector.shape_cast %20 : vector<1x1xf32> to vector<1x1xf32>
      %22 = vector.broadcast %21 : vector<1x1xf32> to vector<8x1xf32>
      %c0_16 = arith.constant 0 : index
      %c0_17 = arith.constant 0 : index
      %23 = vector.load %arg7[%c0_16, %c0_17] : memref<8x1xf32, #tpu.memory_space<vmem>>, vector<8x1xf32>
      tpu.vector_store %arg7[%c0_16, %c0_17], %22 {strides = array<i32>} : memref<8x1xf32, #tpu.memory_space<vmem>>, vector<8x1xf32>,
    } else {
    }
    %c0 = arith.constant 0 : index
    %c0_1 = arith.constant 0 : index
    %3 = vector.load %arg2[%c0, %c0_1] : memref<8x64xf32, #tpu.memory_space<vmem>>, vector<8x64xf32>
    %4 = arith.truncf %3 : vector<8x64xf32> to vector<8x64xbf16>
    %c0_2 = arith.constant 0 : index
    %c0_3 = arith.constant 0 : index
    %5 = vector.load %arg3[%c0_2, %c0_3] : memref<64x128xbf16, #tpu.memory_space<vmem>>, vector<64x128xbf16>
    %cst = arith.constant dense<0.000000e+00> : vector<8x128xf32>
    %6 = tpu.matmul %4, %5, %cst {dimension_numbers = #tpu.dot_dimension_numbers<[1], [0], [0], [1], [0, 0, 1, 1], [], []>} : vector<8x64xbf16>, vector<64x128xbf16>, vector<8x128xf32> -> vector<8x128xf32>
    %c0_4 = arith.constant 0 : index
    %c0_5 = arith.constant 0 : index
    %7 = vector.load %arg4[%c0_4, %c0_5] : memref<1x128xf32, #tpu.memory_space<vmem>>, vector<1x128xf32>
    %8 = vector.broadcast %7 : vector<1x128xf32> to vector<8x128xf32>
    %9 = arith.addf %6, %8 : vector<8x128xf32>
    %cst_6 = arith.constant 0.000000e+00 : f32
    %10 = vector.broadcast %cst_6 : f32 to vector<8x128xf32>
    %11 = arith.maximumf %9, %10 : vector<8x128xf32>
    %c0_7 = arith.constant 0 : index
    %c0_8 = arith.constant 0 : index
    %12 = vector.load %arg5[%c0_7, %c0_8] : memref<1x128xf32, #tpu.memory_space<vmem>>, vector<1x128xf32>
    %13 = vector.broadcast %12 : vector<1x128xf32> to vector<8x128xf32>
    %14 = arith.mulf %11, %13 : vector<8x128xf32>
    %cst_9 = arith.constant dense<0.000000e+00> : vector<8xf32>
    %15 = vector.multi_reduction <add>, %14, %cst_9 [1] : vector<8x128xf32> to vector<8xf32>
    %16 = vector.shape_cast %15 : vector<8xf32> to vector<8x1xf32>
    %c0_10 = arith.constant 0 : index
    %c0_11 = arith.constant 0 : index
    %17 = vector.load %arg7[%c0_10, %c0_11] : memref<8x1xf32, #tpu.memory_space<vmem>>, vector<8x1xf32>
    %18 = arith.addf %17, %16 : vector<8x1xf32>
    %c0_12 = arith.constant 0 : index
    %c0_13 = arith.constant 0 : index
    %19 = vector.load %arg7[%c0_12, %c0_13] : memref<8x1xf32, #tpu.memory_space<vmem>>, vector<8x1xf32>
    tpu.vector_store %arg7[%c0_12, %c0_13], %18 {strides = array<i32>} : memref<8x1xf32, #tpu.memory_space<vmem>>, vector<8x1xf32>,
    return
  }
  func.func @transform_0(%arg0: i32, %arg1: i32) -> (i32, i32) {
    %c0_i32 = arith.constant 0 : i32
    %c0_i32_0 = arith.constant 0 : i32
    return %arg0, %c0_i32 : i32, i32
  }
  func.func @transform_1(%arg0: i32, %arg1: i32) -> (i32, i32) {
    %c0_i32 = arith.constant 0 : i32
    %c0_i32_0 = arith.constant 0 : i32
    return %c0_i32, %arg1 : i32, i32
  }
  func.func @transform_2(%arg0: i32, %arg1: i32) -> (i32, i32) {
    %c0_i32 = arith.constant 0 : i32
    %c0_i32_0 = arith.constant 0 : i32
    return %c0_i32, %arg1 : i32, i32
  }
  func.func @transform_3(%arg0: i32, %arg1: i32) -> (i32, i32) {
    %c0_i32 = arith.constant 0 : i32
    %c0_i32_0 = arith.constant 0 : i32
    return %c0_i32, %arg1 : i32, i32
  }
  func.func @transform_4(%arg0: i32, %arg1: i32) -> (i32, i32) {
    %c0_i32 = arith.constant 0 : i32
    %c0_i32_0 = arith.constant 0 : i32
    %c0_i32_1 = arith.constant 0 : i32
    return %c0_i32, %c0_i32_0 : i32, i32
  }
  func.func @transform_5(%arg0: i32, %arg1: i32) -> (i32, i32) {
    %c0_i32 = arith.constant 0 : i32
    %c0_i32_0 = arith.constant 0 : i32
    return %arg0, %c0_i32 : i32, i32
  }
}

</mosaic_0001>

<bundles_post_ra>
// kernel: classifier_head.1
= control target key start
LH: loop header
LB: loop body
LE: loop exit
PB: predicated region body
PF: predicated region fallthrough
CT: control target
= control target key end

     0   :  { %s307_s0 = inlined_call_operand.hbm [shape: f32[8,64], index: 0, kind: input, shape index: {}]   ;;  %s308_s1 = inlined_call_operand.hbm [shape: bf16[64,128], index: 1, kind: input, shape index: {}]   ;;  %s309_s2 = inlined_call_operand.vmem [shape: f32[1,128], index: 2, kind: input, shape index: {}]   ;;  %s310_s3 = inlined_call_operand.vmem [shape: f32[1,128], index: 3, kind: input, shape index: {}]   ;;  %s311_s4 = inlined_call_operand.<no memory space> [shape: f32[1,1], index: 4, kind: input, shape index: {}]   ;;  %s312_s5 = inlined_call_operand.vmem [shape: f32[8,1], index: 5, kind: output, shape index: {}]  }
   0x1   :  { %v10_v0 = vstv %s311_s4 }
   0x2   :  { %11 = vst [vmem:[#allocation2] sm:$0x1] %v10_v0 }
   0x3   :  { %12 = vsyncpa [#allocation4], 0 }
   0x4   :  { %13 = vsyncpa [#allocation6], 0  ;;  %s247_s20 = smov [#allocation3]   ;;  %s248_s22 = smov [#allocation5]  }
   0x5   :  { %s20_s21 = sshll.u32 %s247_s20, 4  ;;  %s29_s23 = sshll.u32 %s248_s22, 4  ;;  %s21_s21 = int_to_ptr.vmem [resolvable:$true] %s20_s21  ;;  %s30_s23 = int_to_ptr.vmem [resolvable:$true] %s29_s23 }
   0x6   :  { %s211_s24 = scalar_lea.vmem %s21_s21, 128  ;;  %p216_p1 = scmp.lt.s32.totalorder %s21_s21, %s21_s21 }
   0x7   :  { %p212_p0 = scmp.ne.s32.totalorder %s21_s21, %s211_s24  ;;  %p217_p2 = scmp.lt.s32.totalorder %s211_s24, %s211_s24 }
   0x9   :  { %p218_p3 = por %p217_p2, %p216_p1 }
   0xb   :  { %p219_p4 = pnand %p218_p3, %p212_p0 }
   0xd   :  { %222 = shalt.err (!%p219_p4)
}
   0xe   :  { %23 = dma.hbm_to_vmem [thread:$0]  %s307_s0, 128, %s21_s21, [#allocation4]  }
   0xf   :  { %s231_s4 = scalar_lea.vmem %s30_s23, 512  ;;  %p236_p6 = scmp.lt.s32.totalorder %s30_s23, %s30_s23 }
  0x10   :  { %p232_p5 = scmp.ne.s32.totalorder %s30_s23, %s231_s4  ;;  %p237_p7 = scmp.lt.s32.totalorder %s231_s4, %s231_s4 }
  0x12   :  { %p238_p8 = por %p237_p7, %p236_p6 }
  0x14   :  { %p239_p9 = pnand %p238_p8, %p232_p5 }
  0x16   :  { %242 = shalt.err (!%p239_p9)
}
  0x17   :  { %s249_s27 = smov 64   ;;  %s250_s28 = smov 4  }
  0x18   :  { %35 = dma.hbm_to_vmem [thread:$0]  %s308_s1, 512, %s30_s23, [#allocation6], %s249_s27, %s249_s27, %s250_s28  }
  0x19   :  { %243 = dma.done.wait [#allocation4], 128  }
  0x1a   :  { %244 = vsyncadd [#allocation4], 4294967168 }
  0x1b   :  { %245 = dma.done.wait [#allocation6], 512  }
  0x1c   :  { %246 = vsyncadd [#allocation6], 4294966784  ;;  %v251_v1 = vmov 0.0   ;;  %vm252_vm0 = vmmov 0   ;;  %v199_v2 = vld [vmem:[#allocation5 + $0x18] sm:$0xff]   ;;  %v200_v3 = vld [vmem:[#allocation5 + $0x10] sm:$0xff]  }
  0x1d   :  { %181 = vmatprep.subr.bf16.mxu0 %v251_v1  ;;  %189 = vmatprep.mubr.msk.bf16.mxu0 %vm252_vm0, %v251_v1  ;;  %v201_v4 = vld [vmem:[#allocation5 + $0x8] sm:$0xff]   ;;  %v202_v5 = vld [vmem:[#allocation5] sm:$0xff]   ;;  %v62_v6 = vld [vmem:[#allocation3] sm:$0xff]  ;;  %vm103_vm1 = vcmask 523264   ;;  %vm60_vm2 = vcmask 7168  }
  0x1e   :  { %182 = vmatpush3.bf16.msra.mxu0 %v199_v2  ;;  %v63_v7 = vpack.c.bf16 %v62_v6, %v62_v6  ;;  %v168_v8 = vld [vmem:[#allocation2] ss:$0 sm:$0xff] }
  0x1f   :  { %183 = vmatprep.subr.bf16.mxu0 %v251_v1  ;;  %61 = vst.msk [vmem:[%s312_s5] sm:$0xff] %vm60_vm2, %v168_v8  ;;  %v169_v9 = vld [vmem:[%s309_s2] ss:$0 sm:$0xff] }
  0x20   :  { %v175_v13 = vld [vmem:[%s310_s3] ss:$0 sm:$0xff] }
  0x22   :  { %184 = vmatpush3.bf16.msra.mxu0 %v200_v3 }
  0x23   :  { %185 = vmatprep.subr.bf16.mxu0 %v251_v1 }
  0x26   :  { %186 = vmatpush3.bf16.msra.mxu0 %v201_v4  ;;  %v158_v18 = vld [vmem:[%s312_s5] sm:$0xff] }
  0x27   :  { %187 = vmatprep.subr.bf16.mxu0 %v251_v1 }
  0x2a   :  { %188 = vmatpush3.bf16.msra.mxu0 %v202_v5 }
  0x2d   :  { %190 = vmatmul.mubr.msk.bf16.vlgmr.msra.gmra.mxu0 %vm103_vm1, %v63_v7 }
  0xed   :  { %v141_v10 = vpop.f32.mrf.mxu0 }
  0xee   :  { %v142_v11 = vadd.f32 %v169_v9, %v141_v10 }
  0xef   :  { %v191_v12 = vpop.f32.mrf.mxu0 }
  0xf0   :  { %v147_v14 = vmax.f32 %v142_v11, 0.0 }
  0xf1   :  { %v144_v15 = vpop.f32.mrf.mxu0 }
  0xf2   :  { %v155_v16 = vmul.f32 %v175_v13, %v147_v14 }
  0xf3   :  { %v192_v17 = vpop.f32.mrf.mxu0 }
  0xf4   :  { %156 = vadd.xlane.f32.xlu0 %v155_v16 }
 0x17d   :  { %v157_v19 = vpop.xlane.xlu0 %156 }
 0x17e   :  { %v159_v20 = vadd.f32 %v158_v18, %v157_v19 }
 0x180   :  { %161 = vst.msk [vmem:[%s312_s5] sm:$0xff] %vm60_vm2, %v159_v20 }
 0x181   :  { %166 = vsyncpa [#allocation4], 1 }
 0x182   :  { %167 = vsyncpa [#allocation6], 1 }

</bundles_post_ra>
